<compile_context>
chip_gen: v7x
topology: tpu7x:2x2x1
jax: 0.10.0
libtpu: 0.0.40
codegen_flags: <defaults>
</compile_context>

<pallas_src>
import functools

import jax
import jax.numpy as jnp
from jax import lax
from jax.experimental import pallas as pl
from jax.experimental.pallas import tpu as pltpu

EPS = 1e-5  # nn.InstanceNorm2d default eps (affine=False, biased variance)


def _instance_norm_relu(h):
    """h: (C, H*W). Per-channel normalization over the spatial (lane) axis, then ReLU."""
    mean = jnp.mean(h, axis=-1, keepdims=True)
    centered = h - mean
    var = jnp.mean(centered * centered, axis=-1, keepdims=True)
    return jnp.maximum(centered * lax.rsqrt(var + EPS), 0.0)


def resnet2d_block_kernel(x_ref, w1_ref, w2_ref, w3_ref, o_ref, *, ksize, height, width):
    # x_ref: (1, C, H*W) for one batch element; channels on sublanes, spatial on lanes.
    C = x_ref.shape[1]
    HW = x_ref.shape[2]
    H, W = height, width
    pad = (ksize - 1) // 2

    xf = x_ref[0]  # (C, HW)

    # --- Conv 1x1 (no bias) + InstanceNorm + ReLU ---
    h = jnp.dot(w1_ref[...], xf, preferred_element_type=jnp.float32)
    h = _instance_norm_relu(h)

    # --- Conv kxk 'same' (no bias) + InstanceNorm + ReLU ---
    # Zero-pad the flattened spatial (lane) axis so vertically out-of-bounds taps read
    # zeros; horizontally out-of-bounds taps are killed with a column-index mask.
    P = pad * (W + 1)                      # covers max |shift| = pad*W + pad
    hp = jnp.pad(h, ((0, 0), (P, P)))      # (C, HW + 2P)
    col = lax.broadcasted_iota(jnp.int32, (C, HW), 1) % W
    col_mask = {}
    for kw in range(ksize):
        dw = kw - pad
        if dw != 0:
            col_mask[dw] = jnp.logical_and(col + dw >= 0, col + dw < W)

    acc = None
    for kh in range(ksize):
        dh = kh - pad
        for kw in range(ksize):
            dw = kw - pad
            s = dh * W + dw
            tap = hp[:, P + s:P + s + HW]          # static lane shift, (C, HW)
            if dw != 0:
                tap = jnp.where(col_mask[dw], tap, 0.0)
            contrib = jnp.dot(w2_ref[kh, kw], tap,
                              preferred_element_type=jnp.float32)
            acc = contrib if acc is None else acc + contrib
    h = _instance_norm_relu(acc)

    # --- Conv 1x1 (no bias) + InstanceNorm + ReLU ---
    h = jnp.dot(w3_ref[...], h, preferred_element_type=jnp.float32)
    h = _instance_norm_relu(h)

    # --- Residual add (re-read the VMEM-resident input; lane-dense store) ---
    o_ref[0] = h + x_ref[0]


def resnet2d_block(x_nchw, w1, w2_oihw, w3, *, kernel_size=3):
    """x_nchw: (N, C, H, W) f32.  w1/w3: (Cout, Cin).  w2_oihw: (Cout, Cin, k, k) (PyTorch OIHW)."""
    assert kernel_size % 2 == 1, "'same' conv path implemented for odd kernel sizes only"
    N, C, H, W = x_nchw.shape
    HW = H * W
    xf = x_nchw.reshape(N, C, HW).astype(jnp.float32)               # free reshape, no transpose
    w2 = jnp.transpose(w2_oihw, (2, 3, 0, 1)).astype(jnp.float32)   # (k, k, Cout, Cin) -- tiny

    kernel = functools.partial(resnet2d_block_kernel,
                               ksize=kernel_size, height=H, width=W)

    out = pl.pallas_call(
        kernel,
        out_shape=jax.ShapeDtypeStruct((N, C, HW), jnp.float32),
        grid_spec=pltpu.PrefetchScalarGridSpec(
            num_scalar_prefetch=0,
            grid=(N,),
            in_specs=[
                pl.BlockSpec((1, C, HW), lambda n: (n, 0, 0)),
                pl.BlockSpec((C, C), lambda n: (0, 0)),
                pl.BlockSpec((kernel_size, kernel_size, C, C),
                             lambda n: (0, 0, 0, 0)),
                pl.BlockSpec((C, C), lambda n: (0, 0)),
            ],
            out_specs=pl.BlockSpec((1, C, HW), lambda n: (n, 0, 0)),
        ),
        compiler_params=pltpu.CompilerParams(
            dimension_semantics=("parallel",)),
    )(xf, w1.astype(jnp.float32), w2, w3.astype(jnp.float32))

    return out.reshape(N, C, H, W)


def resnet2d(x_nchw, block_params, *, kernel_size=3):
    """ResNet2D: sequentially apply each block's (w1, w2_oihw, w3)."""
    for (w1, w2, w3) in block_params:
        x_nchw = resnet2d_block(x_nchw, w1, w2, w3, kernel_size=kernel_size)
    return x_nchw


# -------- plain-JAX reference (NCHW throughout, matches PyTorch semantics) --------
def _ref_instance_norm_relu(x_nchw):
    mean = jnp.mean(x_nchw, axis=(2, 3), keepdims=True)
    var = jnp.mean(jnp.square(x_nchw - mean), axis=(2, 3), keepdims=True)
    return jnp.maximum((x_nchw - mean) * lax.rsqrt(var + EPS), 0.0)


def resnet2d_block_ref(x, w1, w2_oihw, w3):
    dn = ("NCHW", "OIHW", "NCHW")
    h = lax.conv_general_dilated(x, w1[:, :, None, None], (1, 1), "SAME",
                                 dimension_numbers=dn)
    h = _ref_instance_norm_relu(h)
    h = lax.conv_general_dilated(h, w2_oihw, (1, 1), "SAME", dimension_numbers=dn)
    h = _ref_instance_norm_relu(h)
    h = lax.conv_general_dilated(h, w3[:, :, None, None], (1, 1), "SAME",
                                 dimension_numbers=dn)
    h = _ref_instance_norm_relu(h)
    return h + x


def resnet2d_ref(x, block_params):
    for (w1, w2, w3) in block_params:
        x = resnet2d_block_ref(x, w1, w2, w3)
    return x


if __name__ == "__main__":
    # Small shapes consistent with the module: batch=2, embed_dim=4, spatial=16x16, 2 blocks.
    N, C, H, W = 2, 4, 16, 16
    K = 3
    NUM_BLOCKS = 2

    key = jax.random.PRNGKey(0)
    kx, key = jax.random.split(key)
    x = jax.random.normal(kx, (N, C, H, W), dtype=jnp.float32)

    block_params = []
    for _ in range(NUM_BLOCKS):
        k1, k2, k3, key = jax.random.split(key, 4)
        w1 = jax.random.normal(k1, (C, C), dtype=jnp.float32) / jnp.sqrt(C)
        w2 = jax.random.normal(k2, (C, C, K, K), dtype=jnp.float32) / jnp.sqrt(C * K * K)
        w3 = jax.random.normal(k3, (C, C), dtype=jnp.float32) / jnp.sqrt(C)
        block_params.append((w1, w2, w3))

    out = jax.block_until_ready(resnet2d(x, block_params, kernel_size=K))

    ref = jax.block_until_ready(resnet2d_ref(x, block_params))
    assert out.shape == (N, C, H, W)
    assert jnp.allclose(out, ref, rtol=1e-3, atol=1e-3), "mismatch vs reference"

    print("KERNEL_OK")
</pallas_src>

<mosaic_0001>
module attributes {stable_mosaic.version = 11 : i64} {
  func.func @resnet2d_block_kernel(%arg0: i32, %arg1: memref<1x4x256xf32, #tpu.memory_space<vmem>>, %arg2: memref<4x4xf32, #tpu.memory_space<vmem>>, %arg3: memref<3x3x4x4xf32, #tpu.memory_space<vmem>>, %arg4: memref<4x4xf32, #tpu.memory_space<vmem>>, %arg5: memref<1x4x256xf32, #tpu.memory_space<vmem>>) attributes {dimension_semantics = [#tpu.dimension_semantics<parallel>], iteration_bounds = array<i64: 2>, scalar_prefetch = 0 : i64, scratch_operands = 0 : i64, tpu.core_type = #tpu.core_type<tc>, window_params = [{transform_indices = @transform_0, window_bounds = array<i64: 1, 4, 256>}, {pipeline_mode = #tpu.pipeline_mode<synchronous>, transform_indices = @transform_1, window_bounds = array<i64: 4, 4>}, {pipeline_mode = #tpu.pipeline_mode<synchronous>, transform_indices = @transform_2, window_bounds = array<i64: 3, 3, 4, 4>}, {pipeline_mode = #tpu.pipeline_mode<synchronous>, transform_indices = @transform_3, window_bounds = array<i64: 4, 4>}, {transform_indices = @transform_4, window_bounds = array<i64: 1, 4, 256>}]} {
    %c0 = arith.constant 0 : index
    %c0_0 = arith.constant 0 : index
    %c0_1 = arith.constant 0 : index
    %0 = vector.load %arg1[%c0, %c0_0, %c0_1] : memref<1x4x256xf32, #tpu.memory_space<vmem>>, vector<1x4x256xf32>
    %1 = vector.shape_cast %0 : vector<1x4x256xf32> to vector<4x256xf32>
    %c0_2 = arith.constant 0 : index
    %c0_3 = arith.constant 0 : index
    %2 = vector.load %arg2[%c0_2, %c0_3] : memref<4x4xf32, #tpu.memory_space<vmem>>, vector<4x4xf32>
    %cst = arith.constant dense<0.000000e+00> : vector<4x256xf32>
    %3 = tpu.matmul %2, %1, %cst {dimension_numbers = #tpu.dot_dimension_numbers<[1], [0], [0], [1], [0, 0, 1, 1], [], []>} : vector<4x4xf32>, vector<4x256xf32>, vector<4x256xf32> -> vector<4x256xf32>
    %cst_4 = arith.constant dense<0.000000e+00> : vector<4xf32>
    %4 = vector.multi_reduction <add>, %3, %cst_4 [1] : vector<4x256xf32> to vector<4xf32>
    %5 = vector.shape_cast %4 : vector<4xf32> to vector<4x1xf32>
    %cst_5 = arith.constant 2.560000e+02 : f32
    %6 = vector.broadcast %cst_5 : f32 to vector<4x1xf32>
    %7 = arith.divf %5, %6 : vector<4x1xf32>
    %8 = vector.broadcast %7 : vector<4x1xf32> to vector<4x256xf32>
    %9 = arith.subf %3, %8 : vector<4x256xf32>
    %10 = arith.mulf %9, %9 : vector<4x256xf32>
    %cst_6 = arith.constant dense<0.000000e+00> : vector<4xf32>
    %11 = vector.multi_reduction <add>, %10, %cst_6 [1] : vector<4x256xf32> to vector<4xf32>
    %12 = vector.shape_cast %11 : vector<4xf32> to vector<4x1xf32>
    %cst_7 = arith.constant 2.560000e+02 : f32
    %13 = vector.broadcast %cst_7 : f32 to vector<4x1xf32>
    %14 = arith.divf %12, %13 : vector<4x1xf32>
    %cst_8 = arith.constant 9.99999974E-6 : f32
    %15 = vector.broadcast %cst_8 : f32 to vector<4x1xf32>
    %16 = arith.addf %14, %15 : vector<4x1xf32>
    %17 = math.rsqrt %16 : vector<4x1xf32>
    %18 = vector.broadcast %17 : vector<4x1xf32> to vector<4x256xf32>
    %19 = arith.mulf %9, %18 : vector<4x256xf32>
    %cst_9 = arith.constant 0.000000e+00 : f32
    %20 = vector.broadcast %cst_9 : f32 to vector<4x256xf32>
    %21 = arith.maximumf %19, %20 : vector<4x256xf32>
    %c0_i32 = arith.constant 0 : i32
    %22 = arith.sitofp %c0_i32 : i32 to f32
    %23 = vector.broadcast %22 : f32 to vector<4x17xf32>
    %24 = tpu.concatenate %23, %21 in 1 : vector<4x17xf32>, vector<4x256xf32> -> vector<4x273xf32>
    %25 = vector.broadcast %22 : f32 to vector<4x17xf32>
    %26 = tpu.concatenate %24, %25 in 1 : vector<4x273xf32>, vector<4x17xf32> -> vector<4x290xf32>
    %27 = tpu.iota {dimensions = array<i32: 1>} : vector<4x256xi32>
    %c16_i32 = arith.constant 16 : i32
    %c0_i32_10 = arith.constant 0 : i32
    %28 = arith.cmpi eq, %c16_i32, %c0_i32_10 : i32
    %c1_i32 = arith.constant 1 : i32
    %29 = arith.select %28, %c1_i32, %c16_i32 : i32
    %30 = vector.broadcast %29 : i32 to vector<4x256xi32>
    %31 = arith.remsi %27, %30 : vector<4x256xi32>
    %c0_i32_11 = arith.constant 0 : i32
    %32 = vector.broadcast %c0_i32_11 : i32 to vector<4x256xi32>
    %33 = arith.cmpi ne, %31, %32 : vector<4x256xi32>
    %c0_i32_12 = arith.constant 0 : i32
    %34 = vector.broadcast %c0_i32_12 : i32 to vector<4x256xi32>
    %35 = arith.cmpi slt, %31, %34 : vector<4x256xi32>
    %c0_i32_13 = arith.constant 0 : i32
    %36 = arith.cmpi slt, %29, %c0_i32_13 : i32
    %37 = vector.broadcast %36 : i1 to vector<4x256xi1>
    %38 = vector.broadcast %37 : vector<4x256xi1> to vector<4x256xi1>
    %39 = arith.xori %35, %38 : vector<4x256xi1>
    %40 = arith.andi %39, %33 : vector<4x256xi1>
    %41 = vector.broadcast %29 : i32 to vector<4x256xi32>
    %42 = arith.addi %31, %41 : vector<4x256xi32>
    %43 = arith.select %40, %42, %31 : vector<4x256xi1>, vector<4x256xi32>
    %c-1_i32 = arith.constant -1 : i32
    %44 = vector.broadcast %c-1_i32 : i32 to vector<4x256xi32>
    %45 = arith.addi %43, %44 : vector<4x256xi32>
    %c0_i32_14 = arith.constant 0 : i32
    %46 = vector.broadcast %c0_i32_14 : i32 to vector<4x256xi32>
    %47 = arith.cmpi sge, %45, %46 : vector<4x256xi32>
    %c-1_i32_15 = arith.constant -1 : i32
    %48 = vector.broadcast %c-1_i32_15 : i32 to vector<4x256xi32>
    %49 = arith.addi %43, %48 : vector<4x256xi32>
    %c16_i32_16 = arith.constant 16 : i32
    %50 = vector.broadcast %c16_i32_16 : i32 to vector<4x256xi32>
    %51 = arith.cmpi slt, %49, %50 : vector<4x256xi32>
    %52 = arith.andi %47, %51 : vector<4x256xi1>
    %c1_i32_17 = arith.constant 1 : i32
    %53 = vector.broadcast %c1_i32_17 : i32 to vector<4x256xi32>
    %54 = arith.addi %43, %53 : vector<4x256xi32>
    %c0_i32_18 = arith.constant 0 : i32
    %55 = vector.broadcast %c0_i32_18 : i32 to vector<4x256xi32>
    %56 = arith.cmpi sge, %54, %55 : vector<4x256xi32>
    %c1_i32_19 = arith.constant 1 : i32
    %57 = vector.broadcast %c1_i32_19 : i32 to vector<4x256xi32>
    %58 = arith.addi %43, %57 : vector<4x256xi32>
    %c16_i32_20 = arith.constant 16 : i32
    %59 = vector.broadcast %c16_i32_20 : i32 to vector<4x256xi32>
    %60 = arith.cmpi slt, %58, %59 : vector<4x256xi32>
    %61 = arith.andi %56, %60 : vector<4x256xi1>
    %62 = vector.extract_strided_slice %26 {offsets = [0, 0], sizes = [4, 256], strides = [1, 1]} : vector<4x290xf32> to vector<4x256xf32>
    %cst_21 = arith.constant 0.000000e+00 : f32
    %63 = vector.broadcast %cst_21 : f32 to vector<4x256xf32>
    %64 = arith.select %52, %62, %63 : vector<4x256xi1>, vector<4x256xf32>
    %c0_22 = arith.constant 0 : index
    %c0_23 = arith.constant 0 : index
    %c0_24 = arith.constant 0 : index
    %c0_25 = arith.constant 0 : index
    %65 = vector.load %arg3[%c0_22, %c0_23, %c0_24, %c0_25] : memref<3x3x4x4xf32, #tpu.memory_space<vmem>>, vector<1x1x4x4xf32>
    %66 = vector.shape_cast %65 : vector<1x1x4x4xf32> to vector<4x4xf32>
    %cst_26 = arith.constant dense<0.000000e+00> : vector<4x256xf32>
    %67 = tpu.matmul %66, %64, %cst_26 {dimension_numbers = #tpu.dot_dimension_numbers<[1], [0], [0], [1], [0, 0, 1, 1], [], []>} : vector<4x4xf32>, vector<4x256xf32>, vector<4x256xf32> -> vector<4x256xf32>
    %68 = vector.extract_strided_slice %26 {offsets = [0, 1], sizes = [4, 256], strides = [1, 1]} : vector<4x290xf32> to vector<4x256xf32>
    %c0_27 = arith.constant 0 : index
    %c1 = arith.constant 1 : index
    %c0_28 = arith.constant 0 : index
    %c0_29 = arith.constant 0 : index
    %69 = vector.load %arg3[%c0_27, %c1, %c0_28, %c0_29] : memref<3x3x4x4xf32, #tpu.memory_space<vmem>>, vector<1x1x4x4xf32>
    %70 = vector.shape_cast %69 : vector<1x1x4x4xf32> to vector<4x4xf32>
    %cst_30 = arith.constant dense<0.000000e+00> : vector<4x256xf32>
    %71 = tpu.matmul %70, %68, %cst_30 {dimension_numbers = #tpu.dot_dimension_numbers<[1], [0], [0], [1], [0, 0, 1, 1], [], []>} : vector<4x4xf32>, vector<4x256xf32>, vector<4x256xf32> -> vector<4x256xf32>
    %72 = arith.addf %67, %71 : vector<4x256xf32>
    %73 = vector.extract_strided_slice %26 {offsets = [0, 2], sizes = [4, 256], strides = [1, 1]} : vector<4x290xf32> to vector<4x256xf32>
    %cst_31 = arith.constant 0.000000e+00 : f32
    %74 = vector.broadcast %cst_31 : f32 to vector<4x256xf32>
    %75 = arith.select %61, %73, %74 : vector<4x256xi1>, vector<4x256xf32>
    %c0_32 = arith.constant 0 : index
    %c2 = arith.constant 2 : index
    %c0_33 = arith.constant 0 : index
    %c0_34 = arith.constant 0 : index
    %76 = vector.load %arg3[%c0_32, %c2, %c0_33, %c0_34] : memref<3x3x4x4xf32, #tpu.memory_space<vmem>>, vector<1x1x4x4xf32>
    %77 = vector.shape_cast %76 : vector<1x1x4x4xf32> to vector<4x4xf32>
    %cst_35 = arith.constant dense<0.000000e+00> : vector<4x256xf32>
    %78 = tpu.matmul %77, %75, %cst_35 {dimension_numbers = #tpu.dot_dimension_numbers<[1], [0], [0], [1], [0, 0, 1, 1], [], []>} : vector<4x4xf32>, vector<4x256xf32>, vector<4x256xf32> -> vector<4x256xf32>
    %79 = arith.addf %72, %78 : vector<4x256xf32>
    %80 = vector.extract_strided_slice %26 {offsets = [0, 16], sizes = [4, 256], strides = [1, 1]} : vector<4x290xf32> to vector<4x256xf32>
    %cst_36 = arith.constant 0.000000e+00 : f32
    %81 = vector.broadcast %cst_36 : f32 to vector<4x256xf32>
    %82 = arith.select %52, %80, %81 : vector<4x256xi1>, vector<4x256xf32>
    %c1_37 = arith.constant 1 : index
    %c0_38 = arith.constant 0 : index
    %c0_39 = arith.constant 0 : index
    %c0_40 = arith.constant 0 : index
    %83 = vector.load %arg3[%c1_37, %c0_38, %c0_39, %c0_40] : memref<3x3x4x4xf32, #tpu.memory_space<vmem>>, vector<1x1x4x4xf32>
    %84 = vector.shape_cast %83 : vector<1x1x4x4xf32> to vector<4x4xf32>
    %cst_41 = arith.constant dense<0.000000e+00> : vector<4x256xf32>
    %85 = tpu.matmul %84, %82, %cst_41 {dimension_numbers = #tpu.dot_dimension_numbers<[1], [0], [0], [1], [0, 0, 1, 1], [], []>} : vector<4x4xf32>, vector<4x256xf32>, vector<4x256xf32> -> vector<4x256xf32>
    %86 = arith.addf %79, %85 : vector<4x256xf32>
    %87 = vector.extract_strided_slice %26 {offsets = [0, 17], sizes = [4, 256], strides = [1, 1]} : vector<4x290xf32> to vector<4x256xf32>
    %c1_42 = arith.constant 1 : index
    %c1_43 = arith.constant 1 : index
    %c0_44 = arith.constant 0 : index
    %c0_45 = arith.constant 0 : index
    %88 = vector.load %arg3[%c1_42, %c1_43, %c0_44, %c0_45] : memref<3x3x4x4xf32, #tpu.memory_space<vmem>>, vector<1x1x4x4xf32>
    %89 = vector.shape_cast %88 : vector<1x1x4x4xf32> to vector<4x4xf32>
    %cst_46 = arith.constant dense<0.000000e+00> : vector<4x256xf32>
    %90 = tpu.matmul %89, %87, %cst_46 {dimension_numbers = #tpu.dot_dimension_numbers<[1], [0], [0], [1], [0, 0, 1, 1], [], []>} : vector<4x4xf32>, vector<4x256xf32>, vector<4x256xf32> -> vector<4x256xf32>
    %91 = arith.addf %86, %90 : vector<4x256xf32>
    %92 = vector.extract_strided_slice %26 {offsets = [0, 18], sizes = [4, 256], strides = [1, 1]} : vector<4x290xf32> to vector<4x256xf32>
    %cst_47 = arith.constant 0.000000e+00 : f32
    %93 = vector.broadcast %cst_47 : f32 to vector<4x256xf32>
    %94 = arith.select %61, %92, %93 : vector<4x256xi1>, vector<4x256xf32>
    %c1_48 = arith.constant 1 : index
    %c2_49 = arith.constant 2 : index
    %c0_50 = arith.constant 0 : index
    %c0_51 = arith.constant 0 : index
    %95 = vector.load %arg3[%c1_48, %c2_49, %c0_50, %c0_51] : memref<3x3x4x4xf32, #tpu.memory_space<vmem>>, vector<1x1x4x4xf32>
    %96 = vector.shape_cast %95 : vector<1x1x4x4xf32> to vector<4x4xf32>
    %cst_52 = arith.constant dense<0.000000e+00> : vector<4x256xf32>
    %97 = tpu.matmul %96, %94, %cst_52 {dimension_numbers = #tpu.dot_dimension_numbers<[1], [0], [0], [1], [0, 0, 1, 1], [], []>} : vector<4x4xf32>, vector<4x256xf32>, vector<4x256xf32> -> vector<4x256xf32>
    %98 = arith.addf %91, %97 : vector<4x256xf32>
    %99 = vector.extract_strided_slice %26 {offsets = [0, 32], sizes = [4, 256], strides = [1, 1]} : vector<4x290xf32> to vector<4x256xf32>
    %cst_53 = arith.constant 0.000000e+00 : f32
    %100 = vector.broadcast %cst_53 : f32 to vector<4x256xf32>
    %101 = arith.select %52, %99, %100 : vector<4x256xi1>, vector<4x256xf32>
    %c2_54 = arith.constant 2 : index
    %c0_55 = arith.constant 0 : index
    %c0_56 = arith.constant 0 : index
    %c0_57 = arith.constant 0 : index
    %102 = vector.load %arg3[%c2_54, %c0_55, %c0_56, %c0_57] : memref<3x3x4x4xf32, #tpu.memory_space<vmem>>, vector<1x1x4x4xf32>
    %103 = vector.shape_cast %102 : vector<1x1x4x4xf32> to vector<4x4xf32>
    %cst_58 = arith.constant dense<0.000000e+00> : vector<4x256xf32>
    %104 = tpu.matmul %103, %101, %cst_58 {dimension_numbers = #tpu.dot_dimension_numbers<[1], [0], [0], [1], [0, 0, 1, 1], [], []>} : vector<4x4xf32>, vector<4x256xf32>, vector<4x256xf32> -> vector<4x256xf32>
    %105 = arith.addf %98, %104 : vector<4x256xf32>
    %106 = vector.extract_strided_slice %26 {offsets = [0, 33], sizes = [4, 256], strides = [1, 1]} : vector<4x290xf32> to vector<4x256xf32>
    %c2_59 = arith.constant 2 : index
    %c1_60 = arith.constant 1 : index
    %c0_61 = arith.constant 0 : index
    %c0_62 = arith.constant 0 : index
    %107 = vector.load %arg3[%c2_59, %c1_60, %c0_61, %c0_62] : memref<3x3x4x4xf32, #tpu.memory_space<vmem>>, vector<1x1x4x4xf32>
    %108 = vector.shape_cast %107 : vector<1x1x4x4xf32> to vector<4x4xf32>
    %cst_63 = arith.constant dense<0.000000e+00> : vector<4x256xf32>
    %109 = tpu.matmul %108, %106, %cst_63 {dimension_numbers = #tpu.dot_dimension_numbers<[1], [0], [0], [1], [0, 0, 1, 1], [], []>} : vector<4x4xf32>, vector<4x256xf32>, vector<4x256xf32> -> vector<4x256xf32>
    %110 = arith.addf %105, %109 : vector<4x256xf32>
    %111 = vector.extract_strided_slice %26 {offsets = [0, 34], sizes = [4, 256], strides = [1, 1]} : vector<4x290xf32> to vector<4x256xf32>
    %cst_64 = arith.constant 0.000000e+00 : f32
    %112 = vector.broadcast %cst_64 : f32 to vector<4x256xf32>
    %113 = arith.select %61, %111, %112 : vector<4x256xi1>, vector<4x256xf32>
    %c2_65 = arith.constant 2 : index
    %c2_66 = arith.constant 2 : index
    %c0_67 = arith.constant 0 : index
    %c0_68 = arith.constant 0 : index
    %114 = vector.load %arg3[%c2_65, %c2_66, %c0_67, %c0_68] : memref<3x3x4x4xf32, #tpu.memory_space<vmem>>, vector<1x1x4x4xf32>
    %115 = vector.shape_cast %114 : vector<1x1x4x4xf32> to vector<4x4xf32>
    %cst_69 = arith.constant dense<0.000000e+00> : vector<4x256xf32>
    %116 = tpu.matmul %115, %113, %cst_69 {dimension_numbers = #tpu.dot_dimension_numbers<[1], [0], [0], [1], [0, 0, 1, 1], [], []>} : vector<4x4xf32>, vector<4x256xf32>, vector<4x256xf32> -> vector<4x256xf32>
    %117 = arith.addf %110, %116 : vector<4x256xf32>
    %cst_70 = arith.constant dense<0.000000e+00> : vector<4xf32>
    %118 = vector.multi_reduction <add>, %117, %cst_70 [1] : vector<4x256xf32> to vector<4xf32>
    %119 = vector.shape_cast %118 : vector<4xf32> to vector<4x1xf32>
    %cst_71 = arith.constant 2.560000e+02 : f32
    %120 = vector.broadcast %cst_71 : f32 to vector<4x1xf32>
    %121 = arith.divf %119, %120 : vector<4x1xf32>
    %122 = vector.broadcast %121 : vector<4x1xf32> to vector<4x256xf32>
    %123 = arith.subf %117, %122 : vector<4x256xf32>
    %124 = arith.mulf %123, %123 : vector<4x256xf32>
    %cst_72 = arith.constant dense<0.000000e+00> : vector<4xf32>
    %125 = vector.multi_reduction <add>, %124, %cst_72 [1] : vector<4x256xf32> to vector<4xf32>
    %126 = vector.shape_cast %125 : vector<4xf32> to vector<4x1xf32>
    %cst_73 = arith.constant 2.560000e+02 : f32
    %127 = vector.broadcast %cst_73 : f32 to vector<4x1xf32>
    %128 = arith.divf %126, %127 : vector<4x1xf32>
    %cst_74 = arith.constant 9.99999974E-6 : f32
    %129 = vector.broadcast %cst_74 : f32 to vector<4x1xf32>
    %130 = arith.addf %128, %129 : vector<4x1xf32>
    %131 = math.rsqrt %130 : vector<4x1xf32>
    %132 = vector.broadcast %131 : vector<4x1xf32> to vector<4x256xf32>
    %133 = arith.mulf %123, %132 : vector<4x256xf32>
    %cst_75 = arith.constant 0.000000e+00 : f32
    %134 = vector.broadcast %cst_75 : f32 to vector<4x256xf32>
    %135 = arith.maximumf %133, %134 : vector<4x256xf32>
    %c0_76 = arith.constant 0 : index
    %c0_77 = arith.constant 0 : index
    %136 = vector.load %arg4[%c0_76, %c0_77] : memref<4x4xf32, #tpu.memory_space<vmem>>, vector<4x4xf32>
    %cst_78 = arith.constant dense<0.000000e+00> : vector<4x256xf32>
    %137 = tpu.matmul %136, %135, %cst_78 {dimension_numbers = #tpu.dot_dimension_numbers<[1], [0], [0], [1], [0, 0, 1, 1], [], []>} : vector<4x4xf32>, vector<4x256xf32>, vector<4x256xf32> -> vector<4x256xf32>
    %cst_79 = arith.constant dense<0.000000e+00> : vector<4xf32>
    %138 = vector.multi_reduction <add>, %137, %cst_79 [1] : vector<4x256xf32> to vector<4xf32>
    %139 = vector.shape_cast %138 : vector<4xf32> to vector<4x1xf32>
    %cst_80 = arith.constant 2.560000e+02 : f32
    %140 = vector.broadcast %cst_80 : f32 to vector<4x1xf32>
    %141 = arith.divf %139, %140 : vector<4x1xf32>
    %142 = vector.broadcast %141 : vector<4x1xf32> to vector<4x256xf32>
    %143 = arith.subf %137, %142 : vector<4x256xf32>
    %144 = arith.mulf %143, %143 : vector<4x256xf32>
    %cst_81 = arith.constant dense<0.000000e+00> : vector<4xf32>
    %145 = vector.multi_reduction <add>, %144, %cst_81 [1] : vector<4x256xf32> to vector<4xf32>
    %146 = vector.shape_cast %145 : vector<4xf32> to vector<4x1xf32>
    %cst_82 = arith.constant 2.560000e+02 : f32
    %147 = vector.broadcast %cst_82 : f32 to vector<4x1xf32>
    %148 = arith.divf %146, %147 : vector<4x1xf32>
    %cst_83 = arith.constant 9.99999974E-6 : f32
    %149 = vector.broadcast %cst_83 : f32 to vector<4x1xf32>
    %150 = arith.addf %148, %149 : vector<4x1xf32>
    %151 = math.rsqrt %150 : vector<4x1xf32>
    %152 = vector.broadcast %151 : vector<4x1xf32> to vector<4x256xf32>
    %153 = arith.mulf %143, %152 : vector<4x256xf32>
    %cst_84 = arith.constant 0.000000e+00 : f32
    %154 = vector.broadcast %cst_84 : f32 to vector<4x256xf32>
    %155 = arith.maximumf %153, %154 : vector<4x256xf32>
    %c0_85 = arith.constant 0 : index
    %c0_86 = arith.constant 0 : index
    %c0_87 = arith.constant 0 : index
    %156 = vector.load %arg1[%c0_85, %c0_86, %c0_87] : memref<1x4x256xf32, #tpu.memory_space<vmem>>, vector<1x4x256xf32>
    %157 = vector.shape_cast %156 : vector<1x4x256xf32> to vector<4x256xf32>
    %158 = arith.addf %155, %157 : vector<4x256xf32>
    %c0_88 = arith.constant 0 : index
    %c0_89 = arith.constant 0 : index
    %c0_90 = arith.constant 0 : index
    %159 = vector.load %arg5[%c0_88, %c0_89, %c0_90] : memref<1x4x256xf32, #tpu.memory_space<vmem>>, vector<1x4x256xf32>
    %160 = vector.shape_cast %159 : vector<1x4x256xf32> to vector<4x256xf32>
    %161 = vector.shape_cast %158 : vector<4x256xf32> to vector<1x4x256xf32>
    tpu.vector_store %arg5[%c0_88, %c0_89, %c0_90], %161 {strides = array<i32>} : memref<1x4x256xf32, #tpu.memory_space<vmem>>, vector<1x4x256xf32>,
    return
  }
  func.func @transform_0(%arg0: i32) -> (i32, i32, i32) {
    %c0_i32 = arith.constant 0 : i32
    %c0_i32_0 = arith.constant 0 : i32
    %c0_i32_1 = arith.constant 0 : i32
    return %arg0, %c0_i32, %c0_i32_0 : i32, i32, i32
  }
  func.func @transform_1(%arg0: i32) -> (i32, i32) {
    %c0_i32 = arith.constant 0 : i32
    %c0_i32_0 = arith.constant 0 : i32
    %c0_i32_1 = arith.constant 0 : i32
    return %c0_i32, %c0_i32_0 : i32, i32
  }
  func.func @transform_2(%arg0: i32) -> (i32, i32, i32, i32) {
    %c0_i32 = arith.constant 0 : i32
    %c0_i32_0 = arith.constant 0 : i32
    %c0_i32_1 = arith.constant 0 : i32
    %c0_i32_2 = arith.constant 0 : i32
    %c0_i32_3 = arith.constant 0 : i32
    return %c0_i32, %c0_i32_0, %c0_i32_1, %c0_i32_2 : i32, i32, i32, i32
  }
  func.func @transform_3(%arg0: i32) -> (i32, i32) {
    %c0_i32 = arith.constant 0 : i32
    %c0_i32_0 = arith.constant 0 : i32
    %c0_i32_1 = arith.constant 0 : i32
    return %c0_i32, %c0_i32_0 : i32, i32
  }
  func.func @transform_4(%arg0: i32) -> (i32, i32, i32) {
    %c0_i32 = arith.constant 0 : i32
    %c0_i32_0 = arith.constant 0 : i32
    %c0_i32_1 = arith.constant 0 : i32
    return %arg0, %c0_i32, %c0_i32_0 : i32, i32, i32
  }
}

</mosaic_0001>

<bundles_post_ra>
// kernel: tpu_custom_call.1
= control target key start
LH: loop header
LB: loop body
LE: loop exit
PB: predicated region body
PF: predicated region fallthrough
CT: control target
= control target key end

     0   :  { %9 = vsyncpa [#allocation3], 0  ;;  %s2191_s0 = inlined_call_operand.hbm [shape: f32[2,4,256], index: 0, kind: input, shape index: {}]   ;;  %s2192_s1 = inlined_call_operand.hbm [shape: f32[4,4], index: 1, kind: input, shape index: {}]   ;;  %s2193_s2 = inlined_call_operand.hbm [shape: f32[3,3,4,4], index: 2, kind: input, shape index: {}]   ;;  %s2194_s3 = inlined_call_operand.vmem [shape: f32[4,4], index: 3, kind: input, shape index: {}]   ;;  %s2195_s4 = inlined_call_operand.hbm [shape: f32[2,4,256], index: 4, kind: output, shape index: {}]  }
   0x1   :  { %11 = vsyncpa [#allocation3 + $0x1], 0 }
   0x2   :  { %12 = vsyncpa [#allocation6], 0 }
   0x3   :  { %13 = vsyncpa [#allocation4], 0 }
   0x4   :  { %15 = vsyncpa [#allocation4 + $0x1], 0  ;;  %s1836_s15 = smov 0   ;;  %s1838_s16 = smov 0  }
   0x5   :  { %s1840_s17 = smov 0   ;;  %s1842_s18 = smov 0  }
   0x6 LB: > { %s1857_s19 = sadd.s32 4294967295, %s1793_s18   ;;  %s1482_s20 = sadd.s32 4294967294, %s1793_s18   ;;  %s1793_s18 = sphi %s1842_s18, %s2215_s18   ;;  %s1789_s17 = sphi %s1840_s17, %s2214_s17   ;;  %s1785_s16 = sphi %s1838_s16, %s2213_s16   ;;  %s1781_s15 = sphi %s1836_s15, %s2212_s15  }
   0x7   : > { %p41_p0 = scmp.ne.s32.totalorder %s1785_s16, %s1781_s15  ;;  %p2196_p1 = scmp.eq.s32.totalorder %s1857_s19, 0 }
   0x8   : > { %p134_p3 = scmp.eq.s32.totalorder %s1482_s20, 1  ;;  %p1483_p5 = scmp.ge.s32.totalorder %s1793_s18, 1 }
   0x9   : > { %p1866_p4 = por %p2196_p1, %p41_p0  ;;  %p141_p7 = scmp.lt.s32.totalorder %s1793_s18, 3 }
   0xa   : > { %p1871_p6 = por %p134_p3, %p41_p0  ;;  %s1795_s24 = smov [#allocation5]  }
   0xb   : > { %s2199_s21 = scalar_select %p1866_p4, 1, 0 }
   0xc   : > { %s2200_s22 = scalar_select %p1871_p6, 1, 0 }
   0xd   : > { %p1876_p8 = pnand %p1483_p5, %p141_p7  ;;  %s154_s25 = sshll.u32 %s1795_s24, 4  ;;  %s155_s25 = int_to_ptr.vmem [resolvable:$true] %s154_s25 }
   0xe   : > { %s1796_s26 = smov [#allocation7]   ;;  %s1637_s5 = scalar_lea.hbm %s2192_s1, 64 }
   0xf   : > { %s2201_s23 = scalar_select %p1876_p8, 1, 0 }
  0x10   : > { %p1563_p10 = pneg %p1876_p8  ;;  %s164_s27 = sshll.u32 %s1796_s26, 4  ;;  %s1889_s27 = int_to_ptr.vmem [resolvable:$true] %s164_s27 }
  0x11   : > { %p1638_p12 = scmp.ne.s32.totalorder %s2192_s1, %s1637_s5  ;;  %p1644_p5 = scmp.lt.u32.totalorder %s1637_s5, %s2192_s1 }
  0x12   : > { %p1885_p11 = pnand %p1563_p10, %p2196_p1 }
  0x14   : > { %p1639_p13 = pneg %p1885_p11 }
  0x16   : > { %p1640_p0 = pnand %p1639_p13, %p1638_p12 }
  0x18   : > { %p1641_p3 = pneg %p1640_p0 }
  0x1a   : > { %p1646_p7 = pnand %p1644_p5, %p1641_p3 }
  0x1c   : > { %1649 = shalt.err (!%p1646_p7)
}
  0x1d   : > { %s1650_s10 = scalar_lea.vmem %s155_s25, 64  ;;  %p1658_p2 = scmp.lt.s32.totalorder %s155_s25, %s155_s25 }
  0x1e   : > { %p1651_p10 = scmp.ne.s32.totalorder %s155_s25, %s1650_s10  ;;  %p1659_p6 = scmp.lt.s32.totalorder %s1650_s10, %s1650_s10 }
  0x20   : > { %p1653_p9 = pnand %p1651_p10, %p1639_p13  ;;  %p1660_p4 = por %p1659_p6, %p1658_p2 }
  0x22   : > { %p1654_p1 = pneg %p1653_p9 }
  0x24   : > { %p1661_p8 = pnand %p1660_p4, %p1654_p1 }
  0x26   : > { %1664 = shalt.err (!%p1661_p8)
}
  0x27   : > { %1566 = dma.hbm_to_vmem [thread:$0]  (!%p1885_p11), %s2192_s1, 64, %s155_s25, [#allocation6]  }
  0x28   : > { %s1665_s20 = scalar_lea.hbm %s2193_s2, 576 }
  0x29   : > { %p1666_p9 = scmp.ne.s32.totalorder %s2193_s2, %s1665_s20  ;;  %p1672_p4 = scmp.lt.u32.totalorder %s1665_s20, %s2193_s2 }
  0x2b   : > { %p1668_p2 = pnand %p1666_p9, %p1639_p13 }
  0x2d   : > { %p1669_p1 = pneg %p1668_p2 }
  0x2f   : > { %p1674_p6 = pnand %p1672_p4, %p1669_p1 }
  0x31   : > { %1677 = shalt.err (!%p1674_p6)
}
  0x32   : > { %s1678_s25 = scalar_lea.vmem %s1889_s27, 576  ;;  %p1686_p3 = scmp.lt.s32.totalorder %s1889_s27, %s1889_s27 }
  0x33   : > { %p1679_p8 = scmp.ne.s32.totalorder %s1889_s27, %s1678_s25  ;;  %p1687_p5 = scmp.lt.s32.totalorder %s1678_s25, %s1678_s25 }
  0x35   : > { %p1681_p12 = pnand %p1679_p8, %p1639_p13  ;;  %p1688_p7 = por %p1687_p5, %p1686_p3 }
  0x37   : > { %p1682_p0 = pneg %p1681_p12 }
  0x39   : > { %p1689_p10 = pnand %p1688_p7, %p1682_p0 }
  0x3b   : > { %1692 = shalt.err (!%p1689_p10)
}
  0x3c   : > { %s1797_s5 = smov 64   ;;  %s1798_s6 = smov 4  }
  0x3d   : > { %1569 = dma.hbm_to_vmem [thread:$0]  (!%p1885_p11), %s2193_s2, 576, %s1889_s27, [#allocation6], %s1797_s5, %s1797_s5, %s1798_s6  }
  0x3e   : > { %s1939_s9 = sadd.s32 1, %s1793_s18   ;;  %s28_s10 = sadd.s32 1, %s1789_s17 }
  0x3f   : > { %s25_s11 = ssub.s32 %s1793_s18, %s1939_s9  ;;  %p35_p13 = scmp.ne.s32.totalorder %s1789_s17, %s1785_s16 }
  0x40   : > { %p26_p9 = scmp.eq.s32.totalorder %s25_s11, 0  ;;  %p36_p2 = scmp.eq.s32.totalorder %s1793_s18, 0 }
  0x41   : > { %p2203_p1 = scmp.eq.s32.totalorder %s1857_s19, 1  ;;  %p1580_p6 = scmp.lt.s32.totalorder %s1793_s18, 2 }
  0x42   : > { %s1955_s13 = scalar_select %p26_p9, %s1789_s17, %s28_s10  }
  0x43   : > { %p1949_p4 = por %p2203_p1, %p35_p13  ;;  %p37_p8 = por %p36_p2, %p35_p13 }
  0x44   : > { %s181_s28 = sand.u32 1, %s1789_s17   ;;  %s1533_s27 = sshll.u32 %s1793_s18, 7 }
  0x45   : > { %s1487_s14 = sshll.u32 %s181_s28, 3  ;;  %s1962_s26 = scalar_lea.hbm %s2191_s0, %s1533_s27 }
  0x46   : > { %s185_s29 = scalar_lea.vmem [#allocation2], %s1487_s14  ;;  %p1966_p11 = pnand %p1580_p6, %p37_p8 }
  0x47   : > { %s193_s30 = sshll.u32 %s185_s29, 4  ;;  %s182_s5 = scalar_lea.sflag [#allocation3], %s181_s28  ;;  %s1964_s30 = int_to_ptr.vmem [resolvable:$true] %s193_s30 }
  0x48   : > { %s1693_s6 = scalar_lea.hbm %s1962_s26, 128  ;;  %p1695_p0 = pneg %p1966_p11 }
  0x49   : > { %p1694_p12 = scmp.ne.s32.totalorder %s1962_s26, %s1693_s6  ;;  %s1698_s10 = scalar_lea.hbm %s2191_s0, 256 }
  0x4a   : > { %p1699_p7 = scmp.lt.u32.totalorder %s1962_s26, %s2191_s0  ;;  %p1700_p10 = scmp.lt.u32.totalorder %s1698_s10, %s1693_s6 }
  0x4b   : > { %p1696_p3 = pnand %p1695_p0, %p1694_p12  ;;  %p1702_p9 = scmp.lt.u32.totalorder %s1693_s6, %s1962_s26 }
  0x4c   : > { %p1701_p13 = por %p1700_p10, %p1699_p7 }
  0x4d   : > { %p1697_p5 = pneg %p1696_p3 }
  0x4e   : > { %p1703_p2 = por %p1702_p9, %p1701_p13 }
  0x50   : > { %p1704_p1 = pnand %p1703_p2, %p1697_p5 }
  0x52   : > { %1707 = shalt.err (!%p1704_p1)
}
  0x53   : > { %s1708_s28 = scalar_lea.vmem %s1964_s30, 128  ;;  %s1799_s27 = smov [#allocation2]  }
  0x54   : > { %p1709_p6 = scmp.ne.s32.totalorder %s1964_s30, %s1708_s28  ;;  %s1713_s20 = sshll.u32 %s1799_s27, 4  ;;  %s1714_s20 = int_to_ptr.vmem [resolvable:$false] %s1713_s20 }
  0x55   : > { %s1715_s24 = scalar_lea.vmem %s1714_s20, 256  ;;  %p1716_p3 = scmp.lt.s32.totalorder %s1964_s30, %s1714_s20 }
  0x56   : > { %p1711_p8 = pnand %p1709_p6, %p1695_p0  ;;  %p1717_p7 = scmp.lt.s32.totalorder %s1715_s24, %s1708_s28 }
  0x58   : > { %p1712_p12 = pneg %p1711_p8  ;;  %p1718_p10 = por %p1717_p7, %p1716_p3 }
  0x5a   : > { %p1719_p13 = pnand %p1718_p10, %p1712_p12 }
  0x5c   : > { %1722 = shalt.err (!%p1719_p13)
}
  0x5d   : > { %1573 = dma.hbm_to_vmem [thread:$0]  (!%p1966_p11), %s1962_s26, 128, %s1964_s30, %s182_s5  }
  0x5e   : > { %p2206_p5 = scmp.ne.s32.totalorder %s2201_s23, 0 }
  0x5f   : > { %s1998_s29 = sand.u32 (!%p2206_p5), 1, %s1785_s16   ;;  %p2207_p0 = scmp.ne.s32.totalorder (!%p2206_p5), %s2199_s21, 0 }
  0x60   : > { %202 = sbr.rel (%p2206_p5) target bundleno = 2008 (0x7d8), region = 36  ;;  %s1491_s6 = sshll.u32 (!%p2206_p5), %s1998_s29, 3 }
  0x61   : > { %s205_s7 = scalar_lea.sflag (!%p2206_p5), [#allocation3], %s1998_s29  ;;  %s208_s8 = scalar_lea.vmem (!%p2206_p5), [#allocation2], %s1491_s6 }
  0x67   : > { %1768 = dma.done.wait (%p2207_p0), %s205_s7, 128  }
  0x68   : > { %1770 = vsyncadd (%p2207_p0), %s205_s7, 4294967168  ;;  %p2208_p11 = scmp.eq.s32.totalorder %s1857_s19, 0 }
  0x6a   : > { %1772 = dma.done.wait (%p2208_p11), [#allocation6], 640   ;;  %p2209_p9 = pmov %p2208_p11 }
  0x6b   : > { %v1800_v0 = vmov 0.0   ;;  %v2014_v1 = vld [vmem:[%s208_s8] sm:$0xff]  ;;  %vm249_vm0 = vcmask 1043456   ;;  %v242_v3 = vld [vmem:[#allocation5] sm:$0xf]  ;;  %vm245_vm1 = vcmask 31744   ;;  %v361_v31 = vlaneseq }
  0x6c   : > { %1774 = vsyncadd (%p2209_p9), [#allocation6], 4294966656  ;;  %318 = vmatprep.mubr.f32.mxu0 %v1800_v0  ;;  %763 = vmatprep.mubr.f32.mxu1 %v1800_v0  ;;  %v2018_v2 = vcombine.high %v2014_v1, %v2014_v1  ;;  %s1801_s21 = smov 17   ;;  %vm354_vm2 = vcmask 138240   ;;  %s1802_s23 = smov 112   ;;  %vm681_vm3 = vcmask 916480  }
  0x6d   : > { %s1803_s26 = smov 110   ;;  %s1804_s30 = smov 111   ;;  %v362_v32 = vand.u32 127, %v361_v31  ;;  %v689_v45 = vld [vmem:[#allocation7 + $0xc] sm:$0xf]  ;;  %vm780_vm6 = vcmask 908288  }
  0x6e   : > { %1495 = vmatprep.subr.msk.mxu0 %vm249_vm0, %v2018_v2  ;;  %s1805_s25 = smov 96   ;;  %s1806_s5 = smov 127   ;;  %v773_v54 = vld [vmem:[#allocation7 + $0x10] sm:$0xf]  ;;  %vm869_vm7 = vcmask 900096   ;;  %vm966_vm10 = vcmask 785408  }
  0x6f   : > { %1496 = vmatpush1.msk.msra.mxu0 %vm249_vm0, %v2014_v1  ;;  %s1807_s10 = smov 95   ;;  %s1808_s11 = smov 126   ;;  %v363_v33 = vadd.s32 128, %v362_v32  ;;  %v368_v36 = vand.u32 15, %v362_v32  ;;  %vm417_vm11 = vcmask 1039360   ;;  %vm1065_vm12 = vcmask 777216  }
  0x70   : > { %1497 = vmatmul.mubr.msk.f32.vlgmr.msra.gmra.mrb[0].mxu0 %vm245_vm1, %v242_v3  ;;  %s1809_s14 = smov 94   ;;  %v877_v3 = vld [vmem:[#allocation7 + $0x14] sm:$0xf]  ;;  %vm584_vm13 = vcmask 1031168   ;;  %vm1154_vm14 = vcmask 769024   ;;  %s1534_s20 = sshll.u32 %s1857_s19, 7 }
  0x71   : > { %491 = vmatprep.mubr.f32.mxu0 %v1800_v0  ;;  %v375_v34 = vand.u32 15, %v363_v33  ;;  %v2053_v40 = vadd.s32 4294967295, %v368_v36  ;;  %v2070_v57 = vadd.s32 1, %v368_v36  ;;  %s240_s24 = scalar_lea.vmem [#allocation8], %s1491_s6  ;;  %s1379_s19 = scalar_lea.sflag [#allocation4], %s1998_s29 }
  0x72   : > { %s1393_s7 = sshll.u32 %s240_s24, 4  ;;  %s1810_s6 = smov [#allocation8]   ;;  %s2149_s7 = int_to_ptr.vmem [resolvable:$true] %s1393_s7 }
  0x73   : > { %v2050_v35 = vadd.s32 4294967295, %v375_v34  ;;  %vm390_vm5 = vcmp.ge.s32.totalorder %v2053_v40, 0  ;;  %v2065_v52 = vadd.s32 1, %v375_v34  ;;  %vm400_vm9 = vcmp.lt.s32.totalorder %v2070_v57, 16 }
  0x75   : > { %vm391_vm4 = vcmp.ge.s32.totalorder %v2050_v35, 0  ;;  %vm401_vm8 = vcmp.lt.s32.totalorder %v2065_v52, 16  ;;  %v1162_v35 = vld [vmem:[#allocation7 + $0x20] sm:$0xf] }
 0x143   : > { %v320_v4 = vpop.f32.mrb[0].mxu0 }
 0x144   : > { %v322_v5 = vpop.f32.mrb[1].mxu0  ;;  %v325_v6 = vsel %vm249_vm0, %v320_v4, 0.0 }
 0x145   : > { %v326_v7 = vsel %vm249_vm0, %v322_v5, 0.0 }
 0x146   : > { %v327_v8 = vadd.f32 %v326_v7, %v325_v6 }
 0x148   : > { %328 = vadd.xlane.f32.xlu0 %v327_v8 }
 0x1d5   : > { %v329_v9 = vpop.xlane.xlu0 %328 }
 0x1d6   : > { %v331_v10 = vmul.f32 0.00390625, %v329_v9 }
 0x1d8   : > { %v332_v11 = vsub.f32 %v320_v4, %v331_v10  ;;  %v333_v12 = vsub.f32 %v322_v5, %v331_v10 }
 0x1da   : > { %v334_v13 = vmul.f32 %v332_v11, %v332_v11  ;;  %v335_v14 = vmul.f32 %v333_v12, %v333_v12 }
 0x1dc   : > { %v336_v15 = vsel %vm249_vm0, %v334_v13, 0.0  ;;  %v337_v16 = vsel %vm249_vm0, %v335_v14, 0.0  ;;  %v974_v13 = vld [vmem:[#allocation7 + $0x18] sm:$0xf] }
 0x1dd   : > { %v338_v17 = vadd.f32 %v337_v16, %v336_v15  ;;  %v408_v16 = vld [vmem:[#allocation7 + $0x4] sm:$0xf] }
 0x1df   : > { %339 = vadd.xlane.f32.xlu0 %v338_v17 }
 0x26c   : > { %v340_v18 = vpop.xlane.xlu0 %339 }
 0x26d   : > { %v341_v19 = vmul.f32 0.00390625, %v340_v18 }
 0x26f   : > { %v342_v20 = vadd.f32 1e-05, %v341_v19 }
 0x271   : > { %1631 = vrsqrt.f32 %v342_v20 }
 0x27b   : > { %v1632_v21 = vpop.eup %1631 }
 0x27c   : > { %v344_v22 = vmul.f32 %v1632_v21, %v332_v11  ;;  %v345_v24 = vmul.f32 %v1632_v21, %v333_v12 }
 0x27e   : > { %v346_v23 = vmax.f32 %v344_v22, 0.0  ;;  %v347_v25 = vmax.f32 %v345_v24, 0.0  ;;  %v1058_v22 = vld [vmem:[#allocation7 + $0x1c] sm:$0xf] }
 0x280   : > { %350 = vrot.lane.b32.xlu1 %v346_v23, %s1801_s21 }
 0x284   : > { %352 = vrot.lane.b32.xlu1 %v347_v25, %s1801_s21 }
 0x2f2   : > { %v351_v26 = vpop.permute.xlu1 %350 }
 0x2f3   : > { %v2033_v30 = vsel %vm354_vm2, 0.0, %v351_v26 }
 0x2f4   : > { %v404_v19 = vsel %vm390_vm5, %v2033_v30, 0.0 }
 0x2f6   : > { %v353_v27 = vpop.permute.xlu1 %352 }
 0x2f7   : > { %v2030_v28 = vsel %vm354_vm2, %v351_v26, %v353_v27  ;;  %v360_v29 = vsel %vm354_vm2, %v353_v27, 0.0  ;;  %v406_v26 = vld [vmem:[#allocation7] sm:$0xf] }
 0x2f8   : > { %679 = vrot.lane.b32.xlu1 %v360_v29, %s1802_s23  ;;  %677 = vrot.lane.b32.xlu0 %v2030_v28, %s1802_s23  ;;  %v405_v18 = vsel %vm391_vm4, %v2030_v28, 0.0 }
 0x2fc   : > { %675 = vrot.lane.b32.xlu1 %v2033_v30, %s1802_s23  ;;  %867 = vrot.lane.b32.xlu0 %v360_v29, %s1803_s26  ;;  %s2147_s23 = scalar_lea.hbm %s2195_s4, %s1534_s20 }
 0x300   : > { %776 = vrot.lane.b32.xlu1 %v2030_v28, %s1804_s30  ;;  %962 = vrot.lane.b32.xlu0 %v2030_v28, %s1805_s25 }
 0x304   : > { %778 = vrot.lane.b32.xlu1 %v360_v29, %s1804_s30  ;;  %413 = vrot.lane.b32.xlu0 %v2030_v28, %s1806_s5 }
 0x308   : > { %774 = vrot.lane.b32.xlu1 %v2033_v30, %s1804_s30  ;;  %960 = vrot.lane.b32.xlu0 %v2033_v30, %s1805_s25  ;;  %s1727_s30 = sshll.u32 %s1810_s6, 4  ;;  %s1728_s30 = int_to_ptr.vmem [resolvable:$false] %s1727_s30 }
 0x309   : > { %p1730_p8 = scmp.lt.s32.totalorder %s2149_s7, %s1728_s30 }
 0x30c   : > { %865 = vrot.lane.b32.xlu1 %v2030_v28, %s1803_s26  ;;  %1061 = vrot.lane.b32.xlu0 %v2030_v28, %s1807_s10 }
 0x310   : > { %863 = vrot.lane.b32.xlu1 %v2033_v30, %s1803_s26  ;;  %1059 = vrot.lane.b32.xlu0 %v2033_v30, %s1807_s10  ;;  %s1723_s26 = scalar_lea.vmem %s2149_s7, 128 }
 0x311   : > { %p1724_p2 = scmp.ne.s32.totalorder %s2149_s7, %s1723_s26 }
 0x313   : > { %p1725_p1 = pnand %p1724_p2, %p1949_p4 }
 0x314   : > { %964 = vrot.lane.b32.xlu1 %v360_v29, %s1805_s25  ;;  %582 = vrot.lane.b32.xlu0 %v360_v29, %s1808_s11  ;;  %s1729_s25 = scalar_lea.vmem %s1728_s30, 256 }
 0x315   : > { %p1726_p6 = pneg %p1725_p1  ;;  %p1731_p12 = scmp.lt.s32.totalorder %s1729_s25, %s1723_s26 }
 0x317   : > { %p1732_p3 = por %p1731_p12, %p1730_p8 }
 0x318   : > { %415 = vrot.lane.b32.xlu1 %v360_v29, %s1806_s5  ;;  %1152 = vrot.lane.b32.xlu0 %v360_v29, %s1809_s14 }
 0x319   : > { %p1733_p7 = pnand %p1732_p3, %p1726_p6 }
 0x31c   : > { %411 = vrot.lane.b32.xlu1 %v2033_v30, %s1806_s5  ;;  %1148 = vrot.lane.b32.xlu0 %v2033_v30, %s1809_s14 }
 0x320   : > { %1063 = vrot.lane.b32.xlu1 %v360_v29, %s1807_s10 }
 0x324   : > { %580 = vrot.lane.b32.xlu1 %v2030_v28, %s1808_s11 }
 0x328   : > { %1150 = vrot.lane.b32.xlu1 %v2030_v28, %s1809_s14 }
 0x32c   : > { %578 = vrot.lane.b32.xlu1 %v2033_v30, %s1808_s11 }
 0x36a   : > { %v680_v37 = vpop.permute.xlu1 %679  ;;  %v678_v38 = vpop.permute.xlu0 %677 }
 0x36b   : > { %v683_v39 = vsel %vm681_vm3, %v678_v38, %v680_v37 }
 0x36c   : > { %v687_v41 = vsel %vm391_vm4, %v683_v39, 0.0 }
 0x36d   : > { %1507 = vmatprep.subr.msk.mxu1 %vm249_vm0, %v687_v41 }
 0x36e   : > { %v676_v42 = vpop.permute.xlu1 %675  ;;  %v868_v43 = vpop.permute.xlu0 %867 }
 0x36f   : > { %v682_v44 = vsel %vm681_vm3, %v676_v42, %v678_v38  ;;  %v592_v38 = vld [vmem:[#allocation7 + $0x8] sm:$0xf] }
 0x370   : > { %v686_v46 = vsel %vm390_vm5, %v682_v44, 0.0 }
 0x371   : > { %1508 = vmatpush1.msk.msra.mxu1 %vm249_vm0, %v686_v46 }
 0x372   : > { %v777_v47 = vpop.permute.xlu1 %776  ;;  %v963_v48 = vpop.permute.xlu0 %962  ;;  %1509 = vmatmul.mubr.msk.f32.vlgmr.msra.gmra.mrb[0].mxu1 %vm245_vm1, %v689_v45 }
 0x373   : > { %854 = vmatprep.mubr.f32.mxu1 %v1800_v0 }
 0x376   : > { %v779_v49 = vpop.permute.xlu1 %778  ;;  %v414_v50 = vpop.permute.xlu0 %413 }
 0x377   : > { %v782_v51 = vsel %vm780_vm6, %v777_v47, %v779_v49 }
 0x378   : > { %1510 = vmatprep.subr.msk.mxu1 %vm249_vm0, %v782_v51 }
 0x37a   : > { %v775_v53 = vpop.permute.xlu1 %774  ;;  %v961_v56 = vpop.permute.xlu0 %960 }
 0x37b   : > { %v781_v55 = vsel %vm780_vm6, %v775_v53, %v777_v47  ;;  %v967_v5 = vsel %vm966_vm10, %v961_v56, %v963_v48 }
 0x37c   : > { %1511 = vmatpush1.msk.msra.mxu1 %vm249_vm0, %v781_v55  ;;  %v971_v10 = vsel %vm390_vm5, %v967_v5, 0.0 }
 0x37d   : > { %1512 = vmatmul.mubr.msk.f32.vlgmr.msra.gmra.mrb[0].mxu1 %vm245_vm1, %v773_v54 }
 0x37e   : > { %v866_v58 = vpop.permute.xlu1 %865  ;;  %951 = vmatprep.mubr.f32.mxu1 %v1800_v0  ;;  %v1062_v61 = vpop.permute.xlu0 %1061 }
 0x37f   : > { %v871_v59 = vsel %vm869_vm7, %v866_v58, %v868_v43 }
 0x380   : > { %v875_v60 = vsel %vm401_vm8, %v871_v59, 0.0 }
 0x381   : > { %1513 = vmatprep.subr.msk.mxu1 %vm249_vm0, %v875_v60 }
 0x382   : > { %v864_v62 = vpop.permute.xlu1 %863  ;;  %v1060_v8 = vpop.permute.xlu0 %1059 }
 0x383   : > { %v870_v63 = vsel %vm869_vm7, %v864_v62, %v866_v58  ;;  %v1066_v23 = vsel %vm1065_vm12, %v1060_v8, %v1062_v61 }
 0x384   : > { %v874_v4 = vsel %vm400_vm9, %v870_v63, 0.0 }
 0x385   : > { %1514 = vmatpush1.msk.msra.mxu1 %vm249_vm0, %v874_v4  ;;  %v1267_v4 = vld [vmem:[%s2194_s3] sm:$0xf] }
 0x386   : > { %v965_v6 = vpop.permute.xlu1 %964  ;;  %1515 = vmatmul.mubr.msk.f32.vlgmr.msra.gmra.mrb[0].mxu1 %vm245_vm1, %v877_v3  ;;  %v583_v14 = vpop.permute.xlu0 %582 }
 0x387   : > { %v968_v7 = vsel %vm966_vm10, %v963_v48, %v965_v6  ;;  %1048 = vmatprep.mubr.f32.mxu1 %v1800_v0 }
 0x388   : > { %v972_v9 = vsel %vm391_vm4, %v968_v7, 0.0 }
 0x389   : > { %1516 = vmatprep.subr.msk.mxu1 %vm249_vm0, %v972_v9 }
 0x38a   : > { %v416_v11 = vpop.permute.xlu1 %415  ;;  %1517 = vmatpush1.msk.msra.mxu1 %vm249_vm0, %v971_v10  ;;  %v1153_v24 = vpop.permute.xlu0 %1152 }
 0x38b   : > { %v419_v12 = vsel %vm417_vm11, %v414_v50, %v416_v11 }
 0x38c   : > { %1498 = vmatprep.subr.msk.mxu0 %vm249_vm0, %v419_v12 }
 0x38e   : > { %v412_v15 = vpop.permute.xlu1 %411  ;;  %1518 = vmatmul.mubr.msk.f32.vlgmr.msra.gmra.mrb[0].mxu1 %vm245_vm1, %v974_v13  ;;  %v1149_v29 = vpop.permute.xlu0 %1148 }
 0x38f   : > { %v418_v17 = vsel %vm417_vm11, %v412_v15, %v414_v50  ;;  %1139 = vmatprep.mubr.f32.mxu1 %v1800_v0 }
 0x390   : > { %1499 = vmatpush1.msk.msra.mxu0 %vm249_vm0, %v418_v17 }
 0x391   : > { %1501 = vmatprep.subr.msk.mxu0 %vm249_vm0, %v405_v18  ;;  %1500 = vmatmul.mubr.msk.f32.vlgmr.msra.gmra.mrb[2].mxu0 %vm245_vm1, %v408_v16 }
 0x392   : > { %v1064_v20 = vpop.permute.xlu1 %1063  ;;  %1502 = vmatpush1.msk.msra.mxu0 %vm249_vm0, %v404_v19  ;;  %571 = vmatprep.mubr.f32.mxu0 %v1800_v0 }
 0x393   : > { %v1067_v21 = vsel %vm1065_vm12, %v1062_v61, %v1064_v20 }
 0x394   : > { %1519 = vmatprep.subr.msk.mxu1 %vm249_vm0, %v1067_v21 }
 0x395   : > { %1520 = vmatpush1.msk.msra.mxu1 %vm249_vm0, %v1066_v23 }
 0x396   : > { %v581_v25 = vpop.permute.xlu1 %580  ;;  %1521 = vmatmul.mubr.msk.f32.vlgmr.msra.gmra.mrb[0].mxu1 %vm245_vm1, %v1058_v22 }
 0x397   : > { %v586_v27 = vsel %vm584_vm13, %v581_v25, %v583_v14  ;;  %1236 = vmatprep.mubr.f32.mxu1 %v1800_v0 }
 0x398   : > { %v590_v28 = vsel %vm401_vm8, %v586_v27, 0.0 }
 0x399   : > { %1504 = vmatprep.subr.msk.mxu0 %vm249_vm0, %v590_v28  ;;  %1503 = vmatmul.mubr.msk.f32.vlgmr.msra.gmra.mrb[2].mxu0 %vm245_vm1, %v406_v26 }
 0x39a   : > { %v1151_v30 = vpop.permute.xlu1 %1150  ;;  %666 = vmatprep.mubr.f32.mxu0 %v1800_v0 }
 0x39b   : > { %v1155_v31 = vsel %vm1154_vm14, %v1149_v29, %v1151_v30  ;;  %v1156_v32 = vsel %vm1154_vm14, %v1151_v30, %v1153_v24 }
 0x39c   : > { %v1159_v33 = vsel %vm400_vm9, %v1155_v31, 0.0  ;;  %v1160_v34 = vsel %vm401_vm8, %v1156_v32, 0.0 }
 0x39d   : > { %1522 = vmatprep.subr.msk.mxu1 %vm249_vm0, %v1160_v34 }
 0x39e   : > { %v579_v36 = vpop.permute.xlu1 %578  ;;  %1523 = vmatpush1.msk.msra.mxu1 %vm249_vm0, %v1159_v33 }
 0x39f   : > { %v585_v37 = vsel %vm584_vm13, %v579_v36, %v581_v25  ;;  %1524 = vmatmul.mubr.msk.f32.vlgmr.msra.gmra.mrb[0].mxu1 %vm245_vm1, %v1162_v35 }
 0x3a0   : > { %v589_v39 = vsel %vm400_vm9, %v585_v37, 0.0 }
 0x3a1   : > { %1505 = vmatpush1.msk.msra.mxu0 %vm249_vm0, %v589_v39 }
 0x3a2   : > { %1506 = vmatmul.mubr.msk.f32.vlgmr.msra.gmra.mrb[2].mxu0 %vm245_vm1, %v592_v38 }
 0x3a3   : > { %1341 = vmatprep.mubr.f32.mxu0 %v1800_v0 }
 0x472   : > { %v1238_v40 = vpop.f32.mrb[0].mxu1 }
 0x473   : > { %v1240_v41 = vpop.f32.mrb[1].mxu1 }
 0x475   : > { %v668_v42 = vpop.f32.mrb[2].mxu0 }
 0x476   : > { %v1535_v43 = vadd.f32 %v1238_v40, %v668_v42  ;;  %v670_v44 = vpop.f32.mrb[3].mxu0 }
 0x477   : > { %v1536_v45 = vadd.f32 %v1240_v41, %v670_v44 }
 0x478   : > { %v1245_v46 = vsel %vm249_vm0, %v1535_v43, 0.0 }
 0x479   : > { %v1246_v47 = vsel %vm249_vm0, %v1536_v45, 0.0 }
 0x47a   : > { %v1247_v48 = vadd.f32 %v1246_v47, %v1245_v46 }
 0x47c   : > { %1248 = vadd.xlane.f32.xlu1 %v1247_v48 }
 0x509   : > { %v1249_v49 = vpop.xlane.xlu1 %1248 }
 0x50a   : > { %v1250_v50 = vmul.f32 0.00390625, %v1249_v49 }
 0x50c   : > { %v1251_v51 = vsub.f32 %v1535_v43, %v1250_v50  ;;  %v1252_v52 = vsub.f32 %v1536_v45, %v1250_v50 }
 0x50e   : > { %v1253_v53 = vmul.f32 %v1251_v51, %v1251_v51  ;;  %v1254_v54 = vmul.f32 %v1252_v52, %v1252_v52 }
 0x510   : > { %v1255_v0 = vsel %vm249_vm0, %v1253_v53, 0.0  ;;  %v1256_v55 = vsel %vm249_vm0, %v1254_v54, 0.0 }
 0x511   : > { %v1257_v56 = vadd.f32 %v1256_v55, %v1255_v0 }
 0x513   : > { %1258 = vadd.xlane.f32.xlu0 %v1257_v56 }
 0x5a0   : > { %v1259_v57 = vpop.xlane.xlu0 %1258 }
 0x5a1   : > { %v1260_v58 = vmul.f32 0.00390625, %v1259_v57 }
 0x5a3   : > { %v1261_v59 = vadd.f32 1e-05, %v1260_v58 }
 0x5a5   : > { %1633 = vrsqrt.f32 %v1261_v59 }
 0x5af   : > { %v1634_v60 = vpop.eup %1633 }
 0x5b0   : > { %v1264_v61 = vmul.f32 %v1634_v60, %v1252_v52  ;;  %v1263_v62 = vmul.f32 %v1634_v60, %v1251_v51 }
 0x5b2   : > { %v1266_v63 = vmax.f32 %v1264_v61, 0.0  ;;  %v1265_v3 = vmax.f32 %v1263_v62, 0.0 }
 0x5b4   : > { %1525 = vmatprep.subr.msk.mxu0 %vm249_vm0, %v1266_v63 }
 0x5b5   : > { %1526 = vmatpush1.msk.msra.mxu0 %vm249_vm0, %v1265_v3 }
 0x5b6   : > { %1527 = vmatmul.mubr.msk.f32.vlgmr.msra.gmra.mrb[4].mxu0 %vm245_vm1, %v1267_v4 }
 0x689   : > { %v1343_v5 = vpop.f32.mrb[4].mxu0 }
 0x68a   : > { %v1348_v6 = vsel %vm249_vm0, %v1343_v5, 0.0  ;;  %v1345_v7 = vpop.f32.mrb[5].mxu0 }
 0x68b   : > { %v1349_v8 = vsel %vm249_vm0, %v1345_v7, 0.0 }
 0x68c   : > { %v1350_v9 = vadd.f32 %v1349_v8, %v1348_v6 }
 0x68e   : > { %1351 = vadd.xlane.f32.xlu0 %v1350_v9 }
 0x71b   : > { %v1352_v10 = vpop.xlane.xlu0 %1351 }
 0x71c   : > { %v1353_v11 = vmul.f32 0.00390625, %v1352_v10 }
 0x71e   : > { %v1354_v12 = vsub.f32 %v1343_v5, %v1353_v11  ;;  %v1355_v13 = vsub.f32 %v1345_v7, %v1353_v11 }
 0x720   : > { %v1356_v14 = vmul.f32 %v1354_v12, %v1354_v12  ;;  %v1357_v15 = vmul.f32 %v1355_v13, %v1355_v13 }
 0x722   : > { %v1358_v16 = vsel %vm249_vm0, %v1356_v14, 0.0  ;;  %v1359_v17 = vsel %vm249_vm0, %v1357_v15, 0.0 }
 0x723   : > { %v1360_v18 = vadd.f32 %v1359_v17, %v1358_v16 }
 0x725   : > { %1361 = vadd.xlane.f32.xlu1 %v1360_v18 }
 0x7b2   : > { %v1362_v19 = vpop.xlane.xlu1 %1361 }
 0x7b3   : > { %v1363_v20 = vmul.f32 0.00390625, %v1362_v19 }
 0x7b5   : > { %v1364_v21 = vadd.f32 1e-05, %v1363_v20 }
 0x7b7   : > { %1635 = vrsqrt.f32 %v1364_v21 }
 0x7c1   : > { %v1636_v22 = vpop.eup %1635 }
 0x7c2   : > { %v1366_v23 = vmul.f32 %v1636_v22, %v1354_v12  ;;  %v1367_v24 = vmul.f32 %v1636_v22, %v1355_v13 }
 0x7c4   : > { %v1368_v25 = vmax.f32 %v1366_v23, 0.0  ;;  %v1369_v26 = vmax.f32 %v1367_v24, 0.0 }
 0x7c6   : > { %v1371_v27 = vadd.f32 %v1368_v25, %v2014_v1  ;;  %v1372_v28 = vadd.f32 %v1369_v26, %v2018_v2 }
 0x7c8   : > { %v1375_v29 = vcombine.low %v1371_v27, %v1372_v28 }
 0x7ca   : > { %1377 = vst [vmem:[%s240_s24] sm:$0xff] %v1375_v29 }
 0x7cb   : > { %1736 = shalt.err (!%p1733_p7)
}
 0x7cc   : > { %s1737_s29 = scalar_lea.hbm %s2147_s23, 128  ;;  %s1741_s11 = scalar_lea.hbm %s2195_s4, 256 }
 0x7cd   : > { %p1738_p10 = scmp.ne.s32.totalorder %s2147_s23, %s1737_s29  ;;  %p1742_p0 = scmp.lt.u32.totalorder %s2147_s23, %s2195_s4 }
 0x7ce   : > { %p1743_p11 = scmp.lt.u32.totalorder %s1741_s11, %s1737_s29  ;;  %p1745_p2 = scmp.lt.u32.totalorder %s1737_s29, %s2147_s23 }
 0x7cf   : > { %p1739_p13 = pnand %p1738_p10, %p1949_p4 }
 0x7d0   : > { %p1744_p9 = por %p1743_p11, %p1742_p0 }
 0x7d1   : > { %p1740_p5 = pneg %p1739_p13 }
 0x7d2   : > { %p1746_p1 = por %p1745_p2, %p1744_p9 }
 0x7d4   : > { %p1747_p6 = pnand %p1746_p1, %p1740_p5 }
 0x7d6   : > { %1750 = shalt.err (!%p1747_p6)
}
 0x7d7   : > { %1561 = dma.vmem_to_hbm [thread:$0]  (%p1949_p4), %s2149_s7, 128, %s2147_s23, %s1379_s19  }
 0x7d8 PF: > { %s1405_s27 = sand.u32 1, %s1781_s15   ;;  %p2210_p8 = scmp.ne.s32.totalorder %s2200_s22, 0 }
 0x7d9   : > { %p2211_p12 = scmp.ge.s32.totalorder %s1793_s18, 2  ;;  %s1406_s20 = scalar_lea.sflag [#allocation4], %s1405_s27 }
 0x7db   : > { %p1575_p3 = pnand %p2211_p12, %p2210_p8 }
 0x7dd   : > { %1776 = dma.done.wait (!%p1575_p3), %s1406_s20, 128  }
 0x7de   : > { %1778 = vsyncadd (!%p1575_p3), %s1406_s20, 4294967168  ;;  %p18_p7 = scmp.ge.s32.totalorder %s1939_s9, 4   ;;  %s2212_s15 = smov %s1785_s16 }
 0x7df   : > { %s2213_s16 = smov %s1789_s17  ;;  %s2214_s17 = smov %s1955_s13 }
 0x7e0   : > { %s2215_s18 = smov %s1939_s9  ;;  %20 = sbr.rel (!%p18_p7) target bundleno = 6 (0x6), region = 97 }
 0x7e7   :  { %1411 = vsyncpa [#allocation3], 1 }
 0x7e8   :  { %1413 = vsyncpa [#allocation3 + $0x1], 1 }
 0x7e9   :  { %1414 = vsyncpa [#allocation6], 1 }
 0x7ea   :  { %1415 = vsyncpa [#allocation4], 1 }
 0x7eb   :  { %1417 = vsyncpa [#allocation4 + $0x1], 1 }

</bundles_post_ra>
